<compile_context>
chip_gen: v5e
topology: v5e:2x2
jax: 0.10.0
libtpu: 0.0.40
codegen_flags: <defaults>
</compile_context>

<pallas_src>
import numpy as np
import jax
import jax.numpy as jnp
from jax import lax
from jax.experimental import pallas as pl
from jax.experimental.pallas import tpu as pltpu

IN_CHANNELS = 3
OUT_CHANNELS = 16
KSIZE = 3
STRIDE = 2
PAD = 1
BN_EPS = 1e-5                      # nn.BatchNorm2d default
MAX_TILE_P = 8192                  # output-pixel columns per tile
MIN_TILE_P = 512                   # preferred lower bound when splitting for v7x
VMEM_LIMIT_BYTES = 32 * 1024 * 1024
# Max-pool padding value (acts as -inf; the window center tap is always valid,
# so this value never survives the max).
NEG_LARGE = float(np.finfo(np.float32).min)


def _choose_tile(p_img, n_batch):
    """Largest lane-aligned (multiple-of-128) exact divisor of p_img capped at
    MAX_TILE_P; fall back to the whole image (full-dim block is always legal).
    If the grid would have a single step, split so megacore (v7x, 2 TCs) gets
    at least 2 'parallel' steps."""
    divisors = [d for d in range(128, min(MAX_TILE_P, p_img) + 1, 128)
                if p_img % d == 0]
    if not divisors:
        return p_img
    tile = max(divisors)
    if n_batch * (p_img // tile) < 2:
        splittable = [d for d in divisors if p_img // d >= 2]
        if splittable:
            preferred = [d for d in splittable if d >= MIN_TILE_P]
            tile = max(preferred) if preferred else max(splittable)
    return tile


def _make_kernels(c_in, c_out, tile_p):
    k2 = KSIZE * KSIZE

    def _pre_bn(patches_ref, w_ref, sel_ref, mask_ref, bit_ref):
        """(c_out, tile_p) f32 pre-BatchNorm activations = conv ++ maxpool."""
        patches = patches_ref[...]                                   # (27, TP)
        # main branch: 3x3/s2 conv as ONE (16,27)@(27,TP) MXU matmul; the weight
        # is zero-padded to 16 rows so the result is already sublane-aligned.
        pre = jnp.dot(w_ref[...], patches,
                      preferred_element_type=jnp.float32)            # (16, TP)
        # ext branch: 3x3/s2 max-pool from the SAME zero-padded taps. Border
        # validity comes from a packed 9-bit word per column, expanded
        # sublane-dense with a single broadcast AND (no shifts, no index math).
        valid = (mask_ref[...] & bit_ref[...]) != 0                  # (9, TP)
        pools = []
        for c in range(c_in):
            taps_c = patches[c * k2:(c + 1) * k2, :]                 # (9, TP)
            masked = jnp.where(valid, taps_c, NEG_LARGE)
            pools.append(jnp.max(masked, axis=0, keepdims=True))     # XLU reduce
        pool = jnp.concatenate(pools, axis=0)                        # (3, TP)
        # Deposit the pool rows into channels c_main..c_out-1 with a tiny
        # selector matmul (keeps the result aligned; no sublane-13 concat).
        return pre + jnp.dot(sel_ref[...], pool,
                             preferred_element_type=jnp.float32)     # (16, TP)

    def stats_kernel(patches_ref, w_ref, sel_ref, mask_ref, bit_ref, part_ref):
        y = _pre_bn(patches_ref, w_ref, sel_ref, mask_ref, bit_ref)  # (16, TP)
        # Per-tile (sum, centered M2): numerically stable parallel-variance
        # building blocks; exact tiling means no padded columns to mask.
        s = jnp.sum(y, axis=1, keepdims=True)                        # (16, 1)
        mu = s * (1.0 / tile_p)
        d = y - mu
        m2 = jnp.sum(d * d, axis=1, keepdims=True)                   # (16, 1)
        part_ref[...] = jnp.concatenate([s, m2], axis=1)             # one store

    def apply_kernel(patches_ref, w_ref, sel_ref, mask_ref, bit_ref,
                     scale_ref, shift_ref, out_ref):
        y = _pre_bn(patches_ref, w_ref, sel_ref, mask_ref, bit_ref)
        # Fused per-channel BatchNorm affine + ReLU, one lane-dense store.
        out_ref[...] = jnp.maximum(y * scale_ref[...] + shift_ref[...], 0.0)

    return stats_kernel, apply_kernel


@jax.jit
def initial_block_forward(x_nchw, conv_w, bn_gamma, bn_beta):
    """x: (N, 3, H, W) f32; conv_w: (C_out-3, 3, 3, 3); bn_*: (C_out,)."""
    n, c_in, h, w = x_nchw.shape
    c_main = conv_w.shape[0]
    c_out = c_main + c_in
    h_out = (h + 2 * PAD - KSIZE) // STRIDE + 1
    w_out = (w + 2 * PAD - KSIZE) // STRIDE + 1
    p_img = h_out * w_out
    k2 = KSIZE * KSIZE

    tile_p = _choose_tile(p_img, n)
    num_tiles = p_img // tile_p                  # exact: no padded columns

    # ---- layout plumbing: per-image zero-padded im2col slab (N, 27, P_img) ----
    xpad = jnp.pad(x_nchw.astype(jnp.float32),
                   ((0, 0), (0, 0), (PAD, PAD), (PAD, PAD)))
    taps = []
    for c in range(c_in):                        # row order (c, kh, kw) matches
        for kh in range(KSIZE):                  # conv_w.reshape(c_main, 27)
            for kw in range(KSIZE):
                t = xpad[:, c,
                         kh:kh + STRIDE * (h_out - 1) + 1:STRIDE,
                         kw:kw + STRIDE * (w_out - 1) + 1:STRIDE]
                taps.append(t.reshape(n, p_img))
    patches = jnp.stack(taps, axis=1)            # (N, 27, P_img) f32
    # TODO(synk): extract the 9 strided taps in-kernel (strided pl.ds loads or a
    # host parity-deinterleave of the raw input) to remove this 2.25x-of-input
    # staging slab; kept host-side here because the slab path is known-good.

    # ---- packed per-column 9-bit tap-validity mask (shared by all images) ----
    pix = jnp.arange(p_img, dtype=jnp.int32)
    oh = pix // w_out
    ow = pix % w_out
    bits = jnp.zeros((p_img,), jnp.int32)
    for kh in range(KSIZE):
        ih = oh * STRIDE + (kh - PAD)
        vh = jnp.logical_and(ih >= 0, ih < h)
        for kw in range(KSIZE):
            iw = ow * STRIDE + (kw - PAD)
            v = jnp.logical_and(vh, jnp.logical_and(iw >= 0, iw < w))
            bits = bits | (v.astype(jnp.int32) << (kh * KSIZE + kw))
    tap_mask = bits.reshape(1, p_img)                                   # (1, P)
    bitvals = jnp.left_shift(jnp.int32(1),
                             jnp.arange(k2, dtype=jnp.int32)).reshape(k2, 1)

    # ---- weights: conv padded to 16 rows + pool-row selector ----
    w16 = jnp.concatenate(
        [conv_w.reshape(c_main, c_in * k2).astype(jnp.float32),
         jnp.zeros((c_in, c_in * k2), jnp.float32)], axis=0)            # (16,27)
    sel = jnp.concatenate(
        [jnp.zeros((c_main, c_in), jnp.float32),
         jnp.eye(c_in, dtype=jnp.float32)], axis=0)                     # (16, 3)

    stats_kernel, apply_kernel = _make_kernels(c_in, c_out, tile_p)

    patch_spec = pl.BlockSpec((None, c_in * k2, tile_p), lambda i, t: (i, 0, t))
    w_spec = pl.BlockSpec((c_out, c_in * k2), lambda i, t: (0, 0))
    sel_spec = pl.BlockSpec((c_out, c_in), lambda i, t: (0, 0))
    mask_spec = pl.BlockSpec((1, tile_p), lambda i, t: (0, t))
    bit_spec = pl.BlockSpec((k2, 1), lambda i, t: (0, 0))
    cparams = pltpu.CompilerParams(
        dimension_semantics=("parallel", "parallel"),
        vmem_limit_bytes=VMEM_LIMIT_BYTES)

    # ---- pass 1: per-tile per-channel (sum, centered M2) ----
    partials = pl.pallas_call(
        stats_kernel,
        out_shape=jax.ShapeDtypeStruct((n, num_tiles, c_out, 2), jnp.float32),
        grid=(n, num_tiles),
        in_specs=[patch_spec, w_spec, sel_spec, mask_spec, bit_spec],
        out_specs=pl.BlockSpec((None, None, c_out, 2),
                               lambda i, t: (i, t, 0, 0)),
        compiler_params=cparams,
    )(patches, w16, sel, tap_mask, bitvals)

    # ---- global batch stats via parallel-variance merge -> scale/shift ----
    count = jnp.float32(n * p_img)
    sums = partials[..., 0]                       # (N, T, 16)
    m2s = partials[..., 1]                        # (N, T, 16)
    mean = jnp.sum(sums, axis=(0, 1)) / count     # (16,)
    tile_mean = sums / jnp.float32(tile_p)
    m2 = jnp.sum(m2s, axis=(0, 1)) + jnp.sum(
        jnp.float32(tile_p) * (tile_mean - mean) ** 2, axis=(0, 1))
    var = jnp.maximum(m2 / count, 0.0)            # biased var (training BN)
    inv_std = lax.rsqrt(var + BN_EPS)
    gamma = bn_gamma.astype(jnp.float32)
    beta = bn_beta.astype(jnp.float32)
    scale = (gamma * inv_std).reshape(c_out, 1)
    shift = (beta - mean * gamma * inv_std).reshape(c_out, 1)
    # TODO(synk): BatchNorm running-mean/var momentum update (training-time side
    # effect) is not modeled; it does not affect the forward output.

    # ---- pass 2: recompute activations, fused BN + ReLU, NCHW-direct store ----
    out3 = pl.pallas_call(
        apply_kernel,
        out_shape=jax.ShapeDtypeStruct((n, c_out, p_img), jnp.float32),
        grid=(n, num_tiles),
        in_specs=[patch_spec, w_spec, sel_spec, mask_spec, bit_spec,
                  pl.BlockSpec((c_out, 1), lambda i, t: (0, 0)),
                  pl.BlockSpec((c_out, 1), lambda i, t: (0, 0))],
        out_specs=pl.BlockSpec((None, c_out, tile_p), lambda i, t: (i, 0, t)),
        compiler_params=cparams,
    )(patches, w16, sel, tap_mask, bitvals, scale, shift)

    # Output is already flattened NCHW -> free reshape, no transpose, no slice.
    return out3.reshape(n, c_out, h_out, w_out)


def initial_block_reference(x, conv_w, gamma, beta):
    """Pure-JAX reference with identical semantics (for verification)."""
    main = lax.conv_general_dilated(
        x, conv_w, (STRIDE, STRIDE), ((PAD, PAD), (PAD, PAD)),
        dimension_numbers=("NCHW", "OIHW", "NCHW"),
        precision=lax.Precision.HIGHEST)
    ext = lax.reduce_window(x, -jnp.inf, lax.max, (1, 1, KSIZE, KSIZE),
                            (1, 1, STRIDE, STRIDE),
                            ((0, 0), (0, 0), (PAD, PAD), (PAD, PAD)))
    out = jnp.concatenate([main, ext], axis=1)
    mean = jnp.mean(out, axis=(0, 2, 3), keepdims=True)
    var = jnp.mean((out - mean) ** 2, axis=(0, 2, 3), keepdims=True)
    xhat = (out - mean) * lax.rsqrt(var + BN_EPS)
    y = xhat * gamma.reshape(1, -1, 1, 1) + beta.reshape(1, -1, 1, 1)
    return jnp.maximum(y, 0.0)


if __name__ == "__main__":
    key = jax.random.PRNGKey(0)
    kx, kw, kg, kb = jax.random.split(key, 4)

    N, H, W = 2, 16, 16
    x = jax.random.normal(kx, (N, IN_CHANNELS, H, W), dtype=jnp.float32)

    # Shapes from InitialBlock.__init__ (bias=False); non-trivial BN affine.
    c_main = OUT_CHANNELS - 3
    fan_in = IN_CHANNELS * KSIZE * KSIZE
    conv_w = jax.random.normal(kw, (c_main, IN_CHANNELS, KSIZE, KSIZE),
                               dtype=jnp.float32) / jnp.sqrt(fan_in)
    bn_gamma = 1.0 + 0.1 * jax.random.normal(kg, (OUT_CHANNELS,), jnp.float32)
    bn_beta = 0.1 * jax.random.normal(kb, (OUT_CHANNELS,), jnp.float32)

    out = initial_block_forward(x, conv_w, bn_gamma, bn_beta)
    out = jax.block_until_ready(out)

    ref = initial_block_reference(x, conv_w, bn_gamma, bn_beta)
    np.testing.assert_allclose(np.asarray(out), np.asarray(ref),
                               rtol=1e-4, atol=1e-4)
    assert out.shape == (N, OUT_CHANNELS, H // 2, W // 2)
    print("KERNEL_OK")
</pallas_src>

<mosaic_0001>
module attributes {stable_mosaic.version = 11 : i64} {
  func.func @apply_kernel(%arg0: i32, %arg1: i32, %arg2: memref<1x27x64xf32, #tpu.memory_space<vmem>>, %arg3: memref<16x27xf32, #tpu.memory_space<vmem>>, %arg4: memref<16x3xf32, #tpu.memory_space<vmem>>, %arg5: memref<1x64xi32, #tpu.memory_space<vmem>>, %arg6: memref<9x1xi32, #tpu.memory_space<vmem>>, %arg7: memref<16x1xf32, #tpu.memory_space<vmem>>, %arg8: memref<16x1xf32, #tpu.memory_space<vmem>>, %arg9: memref<1x16x64xf32, #tpu.memory_space<vmem>>) attributes {dimension_semantics = [#tpu.dimension_semantics<parallel>, #tpu.dimension_semantics<parallel>], iteration_bounds = array<i64: 2, 1>, scalar_prefetch = 0 : i64, scratch_operands = 0 : i64, tpu.core_type = #tpu.core_type<tc>, window_params = [{transform_indices = @transform_0, window_bounds = array<i64: 1, 27, 64>}, {pipeline_mode = #tpu.pipeline_mode<synchronous>, transform_indices = @transform_1, window_bounds = array<i64: 16, 27>}, {pipeline_mode = #tpu.pipeline_mode<synchronous>, transform_indices = @transform_2, window_bounds = array<i64: 16, 3>}, {transform_indices = @transform_3, window_bounds = array<i64: 1, 64>}, {pipeline_mode = #tpu.pipeline_mode<synchronous>, transform_indices = @transform_4, window_bounds = array<i64: 9, 1>}, {pipeline_mode = #tpu.pipeline_mode<synchronous>, transform_indices = @transform_5, window_bounds = array<i64: 16, 1>}, {pipeline_mode = #tpu.pipeline_mode<synchronous>, transform_indices = @transform_6, window_bounds = array<i64: 16, 1>}, {transform_indices = @transform_7, window_bounds = array<i64: 1, 16, 64>}]} {
    %c0 = arith.constant 0 : index
    %c0_0 = arith.constant 0 : index
    %c0_1 = arith.constant 0 : index
    %0 = vector.load %arg2[%c0, %c0_0, %c0_1] : memref<1x27x64xf32, #tpu.memory_space<vmem>>, vector<1x27x64xf32>
    %1 = vector.shape_cast %0 : vector<1x27x64xf32> to vector<27x64xf32>
    %c0_2 = arith.constant 0 : index
    %c0_3 = arith.constant 0 : index
    %2 = vector.load %arg3[%c0_2, %c0_3] : memref<16x27xf32, #tpu.memory_space<vmem>>, vector<16x27xf32>
    %cst = arith.constant dense<0.000000e+00> : vector<16x64xf32>
    %3 = tpu.matmul %2, %1, %cst {dimension_numbers = #tpu.dot_dimension_numbers<[1], [0], [0], [1], [0, 0, 1, 1], [], []>} : vector<16x27xf32>, vector<27x64xf32>, vector<16x64xf32> -> vector<16x64xf32>
    %c0_4 = arith.constant 0 : index
    %c0_5 = arith.constant 0 : index
    %4 = vector.load %arg5[%c0_4, %c0_5] : memref<1x64xi32, #tpu.memory_space<vmem>>, vector<1x64xi32>
    %c0_6 = arith.constant 0 : index
    %c0_7 = arith.constant 0 : index
    %5 = vector.load %arg6[%c0_6, %c0_7] : memref<9x1xi32, #tpu.memory_space<vmem>>, vector<9x1xi32>
    %6 = vector.broadcast %4 : vector<1x64xi32> to vector<9x64xi32>
    %7 = vector.broadcast %5 : vector<9x1xi32> to vector<9x64xi32>
    %8 = arith.andi %6, %7 : vector<9x64xi32>
    %c0_i32 = arith.constant 0 : i32
    %9 = vector.broadcast %c0_i32 : i32 to vector<9x64xi32>
    %10 = arith.cmpi ne, %8, %9 : vector<9x64xi32>
    %11 = vector.extract_strided_slice %1 {offsets = [0, 0], sizes = [9, 64], strides = [1, 1]} : vector<27x64xf32> to vector<9x64xf32>
    %cst_8 = arith.constant -3.40282347E+38 : f32
    %12 = vector.broadcast %cst_8 : f32 to vector<9x64xf32>
    %13 = arith.select %10, %11, %12 : vector<9x64xi1>, vector<9x64xf32>
    %cst_9 = arith.constant dense<0xFF800000> : vector<64xf32>
    %14 = vector.multi_reduction <maximumf>, %13, %cst_9 [0] : vector<9x64xf32> to vector<64xf32>
    %15 = vector.shape_cast %14 : vector<64xf32> to vector<1x64xf32>
    %16 = vector.extract_strided_slice %1 {offsets = [9, 0], sizes = [9, 64], strides = [1, 1]} : vector<27x64xf32> to vector<9x64xf32>
    %cst_10 = arith.constant -3.40282347E+38 : f32
    %17 = vector.broadcast %cst_10 : f32 to vector<9x64xf32>
    %18 = arith.select %10, %16, %17 : vector<9x64xi1>, vector<9x64xf32>
    %cst_11 = arith.constant dense<0xFF800000> : vector<64xf32>
    %19 = vector.multi_reduction <maximumf>, %18, %cst_11 [0] : vector<9x64xf32> to vector<64xf32>
    %20 = vector.shape_cast %19 : vector<64xf32> to vector<1x64xf32>
    %21 = vector.extract_strided_slice %1 {offsets = [18, 0], sizes = [9, 64], strides = [1, 1]} : vector<27x64xf32> to vector<9x64xf32>
    %cst_12 = arith.constant -3.40282347E+38 : f32
    %22 = vector.broadcast %cst_12 : f32 to vector<9x64xf32>
    %23 = arith.select %10, %21, %22 : vector<9x64xi1>, vector<9x64xf32>
    %cst_13 = arith.constant dense<0xFF800000> : vector<64xf32>
    %24 = vector.multi_reduction <maximumf>, %23, %cst_13 [0] : vector<9x64xf32> to vector<64xf32>
    %25 = vector.shape_cast %24 : vector<64xf32> to vector<1x64xf32>
    %26 = tpu.concatenate %15, %20, %25 in 0 : vector<1x64xf32>, vector<1x64xf32>, vector<1x64xf32> -> vector<3x64xf32>
    %c0_14 = arith.constant 0 : index
    %c0_15 = arith.constant 0 : index
    %27 = vector.load %arg4[%c0_14, %c0_15] : memref<16x3xf32, #tpu.memory_space<vmem>>, vector<16x3xf32>
    %cst_16 = arith.constant dense<0.000000e+00> : vector<16x64xf32>
    %28 = tpu.matmul %27, %26, %cst_16 {dimension_numbers = #tpu.dot_dimension_numbers<[1], [0], [0], [1], [0, 0, 1, 1], [], []>} : vector<16x3xf32>, vector<3x64xf32>, vector<16x64xf32> -> vector<16x64xf32>
    %29 = arith.addf %3, %28 : vector<16x64xf32>
    %c0_17 = arith.constant 0 : index
    %c0_18 = arith.constant 0 : index
    %30 = vector.load %arg7[%c0_17, %c0_18] : memref<16x1xf32, #tpu.memory_space<vmem>>, vector<16x1xf32>
    %31 = vector.broadcast %30 : vector<16x1xf32> to vector<16x64xf32>
    %32 = arith.mulf %29, %31 : vector<16x64xf32>
    %c0_19 = arith.constant 0 : index
    %c0_20 = arith.constant 0 : index
    %33 = vector.load %arg8[%c0_19, %c0_20] : memref<16x1xf32, #tpu.memory_space<vmem>>, vector<16x1xf32>
    %34 = vector.broadcast %33 : vector<16x1xf32> to vector<16x64xf32>
    %35 = arith.addf %32, %34 : vector<16x64xf32>
    %cst_21 = arith.constant 0.000000e+00 : f32
    %36 = vector.broadcast %cst_21 : f32 to vector<16x64xf32>
    %37 = arith.maximumf %35, %36 : vector<16x64xf32>
    %c0_22 = arith.constant 0 : index
    %c0_23 = arith.constant 0 : index
    %c0_24 = arith.constant 0 : index
    %38 = vector.load %arg9[%c0_22, %c0_23, %c0_24] : memref<1x16x64xf32, #tpu.memory_space<vmem>>, vector<1x16x64xf32>
    %39 = vector.shape_cast %38 : vector<1x16x64xf32> to vector<16x64xf32>
    %40 = vector.shape_cast %37 : vector<16x64xf32> to vector<1x16x64xf32>
    tpu.vector_store %arg9[%c0_22, %c0_23, %c0_24], %40 {strides = array<i32>} : memref<1x16x64xf32, #tpu.memory_space<vmem>>, vector<1x16x64xf32>,
    return
  }
  func.func @transform_0(%arg0: i32, %arg1: i32) -> (i32, i32, i32) {
    %c0_i32 = arith.constant 0 : i32
    %c0_i32_0 = arith.constant 0 : i32
    return %arg0, %c0_i32, %arg1 : i32, i32, i32
  }
  func.func @transform_1(%arg0: i32, %arg1: i32) -> (i32, i32) {
    %c0_i32 = arith.constant 0 : i32
    %c0_i32_0 = arith.constant 0 : i32
    %c0_i32_1 = arith.constant 0 : i32
    return %c0_i32, %c0_i32_0 : i32, i32
  }
  func.func @transform_2(%arg0: i32, %arg1: i32) -> (i32, i32) {
    %c0_i32 = arith.constant 0 : i32
    %c0_i32_0 = arith.constant 0 : i32
    %c0_i32_1 = arith.constant 0 : i32
    return %c0_i32, %c0_i32_0 : i32, i32
  }
  func.func @transform_3(%arg0: i32, %arg1: i32) -> (i32, i32) {
    %c0_i32 = arith.constant 0 : i32
    %c0_i32_0 = arith.constant 0 : i32
    return %c0_i32, %arg1 : i32, i32
  }
  func.func @transform_4(%arg0: i32, %arg1: i32) -> (i32, i32) {
    %c0_i32 = arith.constant 0 : i32
    %c0_i32_0 = arith.constant 0 : i32
    %c0_i32_1 = arith.constant 0 : i32
    return %c0_i32, %c0_i32_0 : i32, i32
  }
  func.func @transform_5(%arg0: i32, %arg1: i32) -> (i32, i32) {
    %c0_i32 = arith.constant 0 : i32
    %c0_i32_0 = arith.constant 0 : i32
    %c0_i32_1 = arith.constant 0 : i32
    return %c0_i32, %c0_i32_0 : i32, i32
  }
  func.func @transform_6(%arg0: i32, %arg1: i32) -> (i32, i32) {
    %c0_i32 = arith.constant 0 : i32
    %c0_i32_0 = arith.constant 0 : i32
    %c0_i32_1 = arith.constant 0 : i32
    return %c0_i32, %c0_i32_0 : i32, i32
  }
  func.func @transform_7(%arg0: i32, %arg1: i32) -> (i32, i32, i32) {
    %c0_i32 = arith.constant 0 : i32
    %c0_i32_0 = arith.constant 0 : i32
    return %arg0, %c0_i32, %arg1 : i32, i32, i32
  }
}

module attributes {stable_mosaic.version = 11 : i64} {
  func.func @stats_kernel(%arg0: i32, %arg1: i32, %arg2: memref<1x27x64xf32, #tpu.memory_space<vmem>>, %arg3: memref<16x27xf32, #tpu.memory_space<vmem>>, %arg4: memref<16x3xf32, #tpu.memory_space<vmem>>, %arg5: memref<1x64xi32, #tpu.memory_space<vmem>>, %arg6: memref<9x1xi32, #tpu.memory_space<vmem>>, %arg7: memref<1x1x16x2xf32, #tpu.memory_space<vmem>>) attributes {dimension_semantics = [#tpu.dimension_semantics<parallel>, #tpu.dimension_semantics<parallel>], iteration_bounds = array<i64: 2, 1>, scalar_prefetch = 0 : i64, scratch_operands = 0 : i64, tpu.core_type = #tpu.core_type<tc>, window_params = [{transform_indices = @transform_0, window_bounds = array<i64: 1, 27, 64>}, {pipeline_mode = #tpu.pipeline_mode<synchronous>, transform_indices = @transform_1, window_bounds = array<i64: 16, 27>}, {pipeline_mode = #tpu.pipeline_mode<synchronous>, transform_indices = @transform_2, window_bounds = array<i64: 16, 3>}, {transform_indices = @transform_3, window_bounds = array<i64: 1, 64>}, {pipeline_mode = #tpu.pipeline_mode<synchronous>, transform_indices = @transform_4, window_bounds = array<i64: 9, 1>}, {transform_indices = @transform_5, window_bounds = array<i64: 1, 1, 16, 2>}]} {
    %c0 = arith.constant 0 : index
    %c0_0 = arith.constant 0 : index
    %c0_1 = arith.constant 0 : index
    %0 = vector.load %arg2[%c0, %c0_0, %c0_1] : memref<1x27x64xf32, #tpu.memory_space<vmem>>, vector<1x27x64xf32>
    %1 = vector.shape_cast %0 : vector<1x27x64xf32> to vector<27x64xf32>
    %c0_2 = arith.constant 0 : index
    %c0_3 = arith.constant 0 : index
    %2 = vector.load %arg3[%c0_2, %c0_3] : memref<16x27xf32, #tpu.memory_space<vmem>>, vector<16x27xf32>
    %cst = arith.constant dense<0.000000e+00> : vector<16x64xf32>
    %3 = tpu.matmul %2, %1, %cst {dimension_numbers = #tpu.dot_dimension_numbers<[1], [0], [0], [1], [0, 0, 1, 1], [], []>} : vector<16x27xf32>, vector<27x64xf32>, vector<16x64xf32> -> vector<16x64xf32>
    %c0_4 = arith.constant 0 : index
    %c0_5 = arith.constant 0 : index
    %4 = vector.load %arg5[%c0_4, %c0_5] : memref<1x64xi32, #tpu.memory_space<vmem>>, vector<1x64xi32>
    %c0_6 = arith.constant 0 : index
    %c0_7 = arith.constant 0 : index
    %5 = vector.load %arg6[%c0_6, %c0_7] : memref<9x1xi32, #tpu.memory_space<vmem>>, vector<9x1xi32>
    %6 = vector.broadcast %4 : vector<1x64xi32> to vector<9x64xi32>
    %7 = vector.broadcast %5 : vector<9x1xi32> to vector<9x64xi32>
    %8 = arith.andi %6, %7 : vector<9x64xi32>
    %c0_i32 = arith.constant 0 : i32
    %9 = vector.broadcast %c0_i32 : i32 to vector<9x64xi32>
    %10 = arith.cmpi ne, %8, %9 : vector<9x64xi32>
    %11 = vector.extract_strided_slice %1 {offsets = [0, 0], sizes = [9, 64], strides = [1, 1]} : vector<27x64xf32> to vector<9x64xf32>
    %cst_8 = arith.constant -3.40282347E+38 : f32
    %12 = vector.broadcast %cst_8 : f32 to vector<9x64xf32>
    %13 = arith.select %10, %11, %12 : vector<9x64xi1>, vector<9x64xf32>
    %cst_9 = arith.constant dense<0xFF800000> : vector<64xf32>
    %14 = vector.multi_reduction <maximumf>, %13, %cst_9 [0] : vector<9x64xf32> to vector<64xf32>
    %15 = vector.shape_cast %14 : vector<64xf32> to vector<1x64xf32>
    %16 = vector.extract_strided_slice %1 {offsets = [9, 0], sizes = [9, 64], strides = [1, 1]} : vector<27x64xf32> to vector<9x64xf32>
    %cst_10 = arith.constant -3.40282347E+38 : f32
    %17 = vector.broadcast %cst_10 : f32 to vector<9x64xf32>
    %18 = arith.select %10, %16, %17 : vector<9x64xi1>, vector<9x64xf32>
    %cst_11 = arith.constant dense<0xFF800000> : vector<64xf32>
    %19 = vector.multi_reduction <maximumf>, %18, %cst_11 [0] : vector<9x64xf32> to vector<64xf32>
    %20 = vector.shape_cast %19 : vector<64xf32> to vector<1x64xf32>
    %21 = vector.extract_strided_slice %1 {offsets = [18, 0], sizes = [9, 64], strides = [1, 1]} : vector<27x64xf32> to vector<9x64xf32>
    %cst_12 = arith.constant -3.40282347E+38 : f32
    %22 = vector.broadcast %cst_12 : f32 to vector<9x64xf32>
    %23 = arith.select %10, %21, %22 : vector<9x64xi1>, vector<9x64xf32>
    %cst_13 = arith.constant dense<0xFF800000> : vector<64xf32>
    %24 = vector.multi_reduction <maximumf>, %23, %cst_13 [0] : vector<9x64xf32> to vector<64xf32>
    %25 = vector.shape_cast %24 : vector<64xf32> to vector<1x64xf32>
    %26 = tpu.concatenate %15, %20, %25 in 0 : vector<1x64xf32>, vector<1x64xf32>, vector<1x64xf32> -> vector<3x64xf32>
    %c0_14 = arith.constant 0 : index
    %c0_15 = arith.constant 0 : index
    %27 = vector.load %arg4[%c0_14, %c0_15] : memref<16x3xf32, #tpu.memory_space<vmem>>, vector<16x3xf32>
    %cst_16 = arith.constant dense<0.000000e+00> : vector<16x64xf32>
    %28 = tpu.matmul %27, %26, %cst_16 {dimension_numbers = #tpu.dot_dimension_numbers<[1], [0], [0], [1], [0, 0, 1, 1], [], []>} : vector<16x3xf32>, vector<3x64xf32>, vector<16x64xf32> -> vector<16x64xf32>
    %29 = arith.addf %3, %28 : vector<16x64xf32>
    %cst_17 = arith.constant dense<0.000000e+00> : vector<16xf32>
    %30 = vector.multi_reduction <add>, %29, %cst_17 [1] : vector<16x64xf32> to vector<16xf32>
    %31 = vector.shape_cast %30 : vector<16xf32> to vector<16x1xf32>
    %cst_18 = arith.constant 1.562500e-02 : f32
    %32 = vector.broadcast %cst_18 : f32 to vector<16x1xf32>
    %33 = arith.mulf %31, %32 : vector<16x1xf32>
    %34 = vector.broadcast %33 : vector<16x1xf32> to vector<16x64xf32>
    %35 = arith.subf %29, %34 : vector<16x64xf32>
    %36 = arith.mulf %35, %35 : vector<16x64xf32>
    %cst_19 = arith.constant dense<0.000000e+00> : vector<16xf32>
    %37 = vector.multi_reduction <add>, %36, %cst_19 [1] : vector<16x64xf32> to vector<16xf32>
    %38 = vector.shape_cast %37 : vector<16xf32> to vector<16x1xf32>
    %39 = tpu.concatenate %31, %38 in 1 : vector<16x1xf32>, vector<16x1xf32> -> vector<16x2xf32>
    %c0_20 = arith.constant 0 : index
    %c0_21 = arith.constant 0 : index
    %c0_22 = arith.constant 0 : index
    %c0_23 = arith.constant 0 : index
    %40 = vector.load %arg7[%c0_20, %c0_21, %c0_22, %c0_23] : memref<1x1x16x2xf32, #tpu.memory_space<vmem>>, vector<1x1x16x2xf32>
    %41 = vector.shape_cast %40 : vector<1x1x16x2xf32> to vector<16x2xf32>
    %42 = vector.shape_cast %39 : vector<16x2xf32> to vector<1x1x16x2xf32>
    tpu.vector_store %arg7[%c0_20, %c0_21, %c0_22, %c0_23], %42 {strides = array<i32>} : memref<1x1x16x2xf32, #tpu.memory_space<vmem>>, vector<1x1x16x2xf32>,
    return
  }
  func.func @transform_0(%arg0: i32, %arg1: i32) -> (i32, i32, i32) {
    %c0_i32 = arith.constant 0 : i32
    %c0_i32_0 = arith.constant 0 : i32
    return %arg0, %c0_i32, %arg1 : i32, i32, i32
  }
  func.func @transform_1(%arg0: i32, %arg1: i32) -> (i32, i32) {
    %c0_i32 = arith.constant 0 : i32
    %c0_i32_0 = arith.constant 0 : i32
    %c0_i32_1 = arith.constant 0 : i32
    return %c0_i32, %c0_i32_0 : i32, i32
  }
  func.func @transform_2(%arg0: i32, %arg1: i32) -> (i32, i32) {
    %c0_i32 = arith.constant 0 : i32
    %c0_i32_0 = arith.constant 0 : i32
    %c0_i32_1 = arith.constant 0 : i32
    return %c0_i32, %c0_i32_0 : i32, i32
  }
  func.func @transform_3(%arg0: i32, %arg1: i32) -> (i32, i32) {
    %c0_i32 = arith.constant 0 : i32
    %c0_i32_0 = arith.constant 0 : i32
    return %c0_i32, %arg1 : i32, i32
  }
  func.func @transform_4(%arg0: i32, %arg1: i32) -> (i32, i32) {
    %c0_i32 = arith.constant 0 : i32
    %c0_i32_0 = arith.constant 0 : i32
    %c0_i32_1 = arith.constant 0 : i32
    return %c0_i32, %c0_i32_0 : i32, i32
  }
  func.func @transform_5(%arg0: i32, %arg1: i32) -> (i32, i32, i32, i32) {
    %c0_i32 = arith.constant 0 : i32
    %c0_i32_0 = arith.constant 0 : i32
    %c0_i32_1 = arith.constant 0 : i32
    return %arg0, %arg1, %c0_i32, %c0_i32_0 : i32, i32, i32, i32
  }
}

</mosaic_0001>

<bundles_post_ra>
// kernel: squeeze.29
= control target key start
LH: loop header
LB: loop body
LE: loop exit
PB: predicated region body
PF: predicated region fallthrough
CT: control target
= control target key end

     0   :  { %s7_s6 = smov 3  ;;  %s21_s9 = smov 3  ;;  %vm4_vm0 = vcmask 64512   ;;  %vm11_vm1 = vcmask 523712   ;;  %vm18_vm2 = vcmask 458112   ;;  %vm25_vm3 = vcmask 392512   ;;  %s119_s0 = inlined_call_operand.vmem [shape: f32[2,1,8,8], index: 0, kind: input, shape index: {}]   ;;  %s120_s1 = inlined_call_operand.vmem [shape: f32[2,1,64], index: 1, kind: output, shape index: {}]  }
   0x1   :  { %v61_v0 = vld [vmem:[%s119_s0 + $0x7] ss:$8 sm:%s7_s6]   ;;  %s75_s10 = smov 56   ;;  %v63_v1 = vld [vmem:[%s119_s0 + $0x5] ss:$8 sm:%s21_s9]   ;;  %s76_s13 = smov 40  }
   0x2   :  { %9 = vrot.lane.b32.xlu0 %v61_v0, %s75_s10  ;;  %23 = vrot.lane.b32.xlu1 %v63_v1, %s76_s13  ;;  %s14_s14 = smov 3  ;;  %s28_s15 = smov 3  ;;  %vm32_vm4 = vcmask 326912   ;;  %vm39_vm5 = vcmask 261312   ;;  %vm46_vm6 = vcmask 195712   ;;  %vm53_vm7 = vcmask 130112  }
   0x3   :  { %s35_s16 = smov 3  ;;  %v62_v3 = vld [vmem:[%s119_s0 + $0x6] ss:$8 sm:%s14_s14]   ;;  %s77_s21 = smov 24   ;;  %v64_v4 = vld [vmem:[%s119_s0 + $0x4] ss:$8 sm:%s28_s15]  }
   0x4   :  { %v65_v2 = vld [vmem:[%s119_s0 + $0x3] ss:$8 sm:%s35_s16]   ;;  %s42_s24 = smov 3  ;;  %s78_s25 = smov 48  }
   0x5   :  { %37 = vrot.lane.b32.xlu2 %v65_v2, %s77_s21  ;;  %s79_s26 = smov 32   ;;  %s49_s27 = smov 3  ;;  %v66_v5 = vld [vmem:[%s119_s0 + $0x2] ss:$8 sm:%s42_s24]  }
   0x6   :  { %v67_v6 = vld [vmem:[%s119_s0 + $0x1] ss:$8 sm:%s49_s27]   ;;  %s80_s3 = smov 16   ;;  %s81_s4 = smov 8  }
   0x7   :  { %s2_s5 = smov 3 }
   0x8   :  { %v3_v7 = vld [vmem:[%s119_s0] ss:$8 sm:%s2_s5]  }
   0x9   :  { %5 = vst.msk [vmem:[#allocation0] sm:$0x3] %vm4_vm0, %v3_v7  }
   0xa   :  { %16 = vrot.lane.b32.xlu0 %v62_v3, %s78_s25  ;;  %30 = vrot.lane.b32.xlu1 %v64_v4, %s79_s26 }
   0xd   :  { %44 = vrot.lane.b32.xlu2 %v66_v5, %s80_s3 }
  0x12   :  { %51 = vrot.lane.b32.xlu0 %v67_v6, %s81_s4 }
  0x5f   :  { %v38_v8 = vpop.permute.xlu2 %37  }
  0x67   :  { %v45_v9 = vpop.permute.xlu2 %44  }
  0x74   :  { %v10_v10 = vpop.permute.xlu0 %9   ;;  %v24_v11 = vpop.permute.xlu1 %23  }
  0x75   :  { %12 = vst.msk [vmem:[#allocation0] sm:$0x3] %vm11_vm1, %v10_v10  }
  0x7c   :  { %v17_v12 = vpop.permute.xlu0 %16   ;;  %v31_v13 = vpop.permute.xlu1 %30  }
  0x7d   :  { %19 = vst.msk [vmem:[#allocation0] sm:$0x3] %vm18_vm2, %v17_v12  }
  0x7e   :  { %26 = vst.msk [vmem:[#allocation0] sm:$0x3] %vm25_vm3, %v24_v11  }
  0x7f   :  { %33 = vst.msk [vmem:[#allocation0] sm:$0x3] %vm32_vm4, %v31_v13  }
  0x80   :  { %40 = vst.msk [vmem:[#allocation0] sm:$0x3] %vm39_vm5, %v38_v8  }
  0x81   :  { %47 = vst.msk [vmem:[#allocation0] sm:$0x3] %vm46_vm6, %v45_v9  }
  0x84   :  { %v52_v14 = vpop.permute.xlu0 %51  }
  0x85   :  { %54 = vst.msk [vmem:[#allocation0] sm:$0x3] %vm53_vm7, %v52_v14  }
  0x8c   :  { %v57_v15 = vld [vmem:[#allocation0] sm:$0x3] }
  0x8d   :  { %60 = vst [vmem:[%s120_s1] sm:$0x3] %v57_v15 }

// kernel: initial_block_forward.3
= control target key start
LH: loop header
LB: loop body
LE: loop exit
PB: predicated region body
PF: predicated region fallthrough
CT: control target
= control target key end

     0   :  { %s713_s24 = smov 0   ;;  %s715_s25 = smov 0   ;;  %s802_s0 = inlined_call_operand.vmem [shape: f32[2,27,64], index: 0, kind: input, shape index: {}]   ;;  %s803_s1 = inlined_call_operand.vmem [shape: f32[16,27], index: 1, kind: input, shape index: {}]   ;;  %s804_s2 = inlined_call_operand.vmem [shape: f32[16,3], index: 2, kind: input, shape index: {}]   ;;  %s805_s3 = inlined_call_operand.vmem [shape: s32[1,64], index: 3, kind: input, shape index: {}]   ;;  %s806_s4 = inlined_call_operand.vmem [shape: s32[9,1], index: 4, kind: input, shape index: {}]   ;;  %s807_s5 = inlined_call_operand.vmem [shape: f32[16,1], index: 5, kind: input, shape index: {}]   ;;  %s808_s6 = inlined_call_operand.vmem [shape: f32[16,1], index: 6, kind: input, shape index: {}]   ;;  %s809_s7 = inlined_call_operand.vmem [shape: f32[2,16,64], index: 7, kind: output, shape index: {}]  }
   0x1   :  { %s717_s26 = smov 0  }
   0x2 LB: > { %s29_s27 = sadd.s32 1, %s666_s25  ;;  %p599_p0 = scmp.ge.s32.totalorder %s670_s26, 1  ;;  %s670_s26 = sphi %s717_s26, %s17_s26   ;;  %s666_s25 = sphi %s715_s25, %s813_s25   ;;  %s662_s24 = sphi %s713_s24, %s812_s24  }
   0x3   : > { %p31_p1 = scmp.ge.s32.totalorder %s29_s27, 2  ;;  %p264_p2 = scmp.lt.s32.totalorder %s670_s26, 3 }
   0x5   : > { %s815_s27 = smov (%p31_p1, %s29_s27), 0  ;;  %p265_p3 = pnand %p599_p0, %p264_p2 }
   0x6   : > { %p305_p4 = scmp.lt.s32.totalorder (!%p265_p3), %s662_s24, 1 }
   0x7   : > { %268 = sbr.rel (%p265_p3) target bundleno = 300 (0x12c), region = 48 }
   0xc   : > { %v331_v0 = vld [vmem:[%s806_s4] sm:$0xff]  ;;  %v672_v1 = vmov 0   ;;  %v332_v2 = vld [vmem:[%s806_s4 + $0x8] sm:$0x1]  ;;  %s817_s24 = smov (!%p305_p4, %s662_s24), 1  ;;  %vm407_vm0 = vcmask 1042432  }
   0xd   : > { %644 = vset.pattern.permute.xlu0 %v672_v1  ;;  %645 = vset.pattern.permute.xlu1 %v672_v1  ;;  %s612_s9 = sshll.u32 %s817_s24, 5  ;;  %v647_v7 = vld [vmem:[%s805_s3] ss:$0 sm:$0xff]  ;;  %vm434_vm1 = vcmask 220160   ;;  %v329_v9 = vld [vmem:[%s803_s1 + $0x8] sm:$0xff]  ;;  %vm359_vm2 = vcmask 1046528  }
   0xe   : > { %335 = vperm.xlu0 %644, %v331_v0   ;;  %646 = vset.pattern.permute.xlu2 %v672_v1  ;;  %s312_s12 = scalar_lea.vmem %s802_s0, %s612_s9  ;;  %v328_v8 = vld [vmem:[%s803_s1] sm:$0xff]  ;;  %vm377_vm3 = vcmask 1045504   ;;  %v467_v20 = vld [vmem:[%s807_s5 + $0x8] sm:$0xff]  ;;  %vm346_vm5 = vcmask 523264   ;;  %vm348_vm6 = vcmask 516096   ;;  %vm394_vm8 = vcmask 1040384  }
   0xf   : > { %v327_v3 = vld [vmem:[%s312_s12 + $0x18] sm:$0x7]  ;;  %v326_v4 = vld [vmem:[%s312_s12 + $0x10] sm:$0xff]  ;;  %v325_v5 = vld [vmem:[%s312_s12 + $0x8] sm:$0xff]  ;;  %vm396_vm9 = vcmask 1041408   ;;  %vm400_vm10 = vcmask 23552  }
  0x10   : > { %607 = vmatpush.msk.msra.mxu1 %vm407_vm0, %v327_v3  ;;  %615 = vmatpush.msk.msra.mxu2 %vm407_vm0, %v327_v3  ;;  %v324_v6 = vld [vmem:[%s312_s12] sm:$0xff]  ;;  %v360_v14 = vrot.slane %v325_v5, 1  ;;  %v361_v15 = vrot.slane %v326_v4, 1  ;;  %v378_v16 = vrot.slane %v326_v4, 2  ;;  %v379_v17 = vrot.slane %v327_v3, 2  ;;  %v481_v21 = vld [vmem:[%s808_s6 + $0x8] sm:$0xff] }
  0x11   : > { %v466_v10 = vld [vmem:[%s807_s5] sm:$0xff]  ;;  %v399_v60 = vld [vmem:[%s804_s2 + $0x8] sm:$0xff]  ;;  %s613_s12 = sshll.u32 %s817_s24, 4 }
  0x12   : > { %456 = vmatpush.msra.mxu1 %v326_v4  ;;  %616 = vmatpush.msra.mxu2 %v326_v4  ;;  %v480_v12 = vld [vmem:[%s808_s6] sm:$0xff]  ;;  %v362_v19 = vsel %vm359_vm2, %v360_v14, %v361_v15  ;;  %v380_v22 = vsel %vm377_vm3, %v378_v16, %v379_v17  ;;  %s323_s15 = scalar_lea.vmem %s809_s7, %s613_s12 }
  0x13   : > { %470 = vperm.xlu1 %645, %v466_v10   ;;  %484 = vperm.xlu2 %646, %v480_v12   ;;  %v398_v59 = vld [vmem:[%s804_s2] sm:$0xff] }
  0x14   : > { %457 = vmatpush.msra.mxu1 %v325_v5  ;;  %617 = vmatpush.msra.mxu2 %v325_v5 }
  0x16   : > { %338 = vperm.xlu0 %644, %v332_v2   ;;  %458 = vmatpush.msra.mxu1 %v324_v6 }
  0x17   : > { %618 = vmatpush.msra.mxu2 %v324_v6  ;;  %608 = vmatmul.msk.f32.vlgmr.msra.gmra.mxu1 %vm434_vm1, %v328_v8 }
  0x18   : > { %609 = vmatmul.msk.f32.vlgmr.msra.gmra.mxu2 %vm434_vm1, %v329_v9 }
  0x1b   : > { %475 = vperm.xlu1 %645, %v467_v20   ;;  %489 = vperm.xlu2 %646, %v481_v21  }
  0x6d   : > { %v485_v0 = vpop.permute.xlu2 %484 }
  0x80   : > { %v336_v11 = vpop.permute.xlu0 %335 }
  0x81   : > { %v340_v13 = vand.u32 %v647_v7, %v336_v11  ;;  %v490_v11 = vpop.permute.xlu2 %489 }
  0x83   : > { %vm760_vm4 = vcmp.ne.s32.totalorder %v340_v13, 0 }
  0x84   : > { %v344_v23 = vsel %vm760_vm4, %v324_v6, -3.4028235e+38  ;;  %v365_v24 = vsel %vm760_vm4, %v362_v19, -3.4028235e+38  ;;  %v383_v27 = vsel %vm760_vm4, %v380_v22, -3.4028235e+38 }
  0x85   : > { %v347_v28 = vsel %vm346_vm5, %v344_v23, -inf  ;;  %v367_v29 = vsel %vm346_vm5, %v365_v24, -inf  ;;  %v385_v35 = vsel %vm346_vm5, %v383_v27, -inf  ;;  %v471_v62 = vpop.permute.xlu1 %470 }
  0x88   : > { %v339_v25 = vpop.permute.xlu0 %338 }
  0x89   : > { %v341_v26 = vand.u32 %v647_v7, %v339_v25 }
  0x8b   : > { %vm343_vm7 = vcmp.ne.s32.totalorder %v341_v26, 0 }
  0x8c   : > { %v345_v30 = vsel %vm343_vm7, %v325_v5, -3.4028235e+38  ;;  %v366_v31 = vsel %vm343_vm7, %v361_v15, -3.4028235e+38  ;;  %v384_v32 = vsel %vm343_vm7, %v379_v17, -3.4028235e+38 }
  0x8d   : > { %v349_v33 = vsel %vm348_vm6, %v345_v30, -inf  ;;  %v368_v34 = vsel %vm348_vm6, %v366_v31, -inf  ;;  %v386_v36 = vsel %vm348_vm6, %v384_v32, -inf  ;;  %v476_v9 = vpop.permute.xlu1 %475 }
  0x8e   : > { %v350_v37 = vmax.f32 %v347_v28, %v349_v33  ;;  %v369_v38 = vmax.f32 %v367_v29, %v368_v34  ;;  %v387_v39 = vmax.f32 %v385_v35, %v386_v36 }
  0x90   : > { %v351_v40 = vrot.slane %v350_v37, 4  ;;  %v370_v41 = vrot.slane %v369_v38, 4  ;;  %v388_v42 = vrot.slane %v387_v39, 4 }
  0x92   : > { %v352_v43 = vmax.f32 %v350_v37, %v351_v40  ;;  %v371_v44 = vmax.f32 %v369_v38, %v370_v41  ;;  %v389_v45 = vmax.f32 %v387_v39, %v388_v42 }
  0x94   : > { %v353_v46 = vrot.slane %v352_v43, 2  ;;  %v372_v47 = vrot.slane %v371_v44, 2  ;;  %v390_v48 = vrot.slane %v389_v45, 2  ;;  %v460_v63 = vpop.f32.mrf.mxu1 }
  0x96   : > { %v354_v49 = vmax.f32 %v352_v43, %v353_v46  ;;  %v373_v50 = vmax.f32 %v371_v44, %v372_v47  ;;  %v391_v51 = vmax.f32 %v389_v45, %v390_v48 }
  0x98   : > { %v355_v52 = vrot.slane %v354_v49, 1  ;;  %v374_v53 = vrot.slane %v373_v50, 1  ;;  %v392_v54 = vrot.slane %v391_v51, 1 }
  0x9a   : > { %v356_v55 = vmax.f32 %v354_v49, %v355_v52  ;;  %v375_v56 = vmax.f32 %v373_v50, %v374_v53  ;;  %v393_v57 = vmax.f32 %v391_v51, %v392_v54 }
  0x9b   : > { %v463_v4 = vpop.f32.mrf.mxu2 }
  0x9c   : > { %v395_v58 = vsel %vm394_vm8, %v356_v55, %v375_v56 }
  0x9d   : > { %v397_v61 = vsel %vm396_vm9, %v395_v58, %v393_v57 }
  0x9e   : > { %604 = vmatpush.msk.msra.mxu0 %vm407_vm0, %v397_v61  ;;  %614 = vmatpush.msk.msra.mxu3 %vm407_vm0, %v397_v61 }
  0x9f   : > { %605 = vmatmul.msk.f32.vlgmr.msra.gmra.mxu0 %vm400_vm10, %v398_v59  ;;  %606 = vmatmul.msk.f32.vlgmr.msra.gmra.mxu3 %vm400_vm10, %v399_v60 }
 0x11c   : > { %v428_v1 = vpop.f32.mrf.mxu0 }
 0x11d   : > { %v461_v2 = vadd.f32 %v460_v63, %v428_v1 }
 0x11f   : > { %v478_v3 = vmul.f32 %v471_v62, %v461_v2 }
 0x121   : > { %v492_v5 = vadd.f32 %v485_v0, %v478_v3 }
 0x122   : > { %v431_v6 = vpop.f32.mrf.mxu3 }
 0x123   : > { %v494_v7 = vmax.f32 %v492_v5, 0.0  ;;  %v464_v8 = vadd.f32 %v463_v4, %v431_v6 }
 0x125   : > { %496 = vst.msk [vmem:[%s323_s15] sm:$0xff] %vm346_vm5, %v494_v7  ;;  %v479_v10 = vmul.f32 %v476_v9, %v464_v8 }
 0x127   : > { %v493_v12 = vadd.f32 %v490_v11, %v479_v10 }
 0x129   : > { %v495_v13 = vmax.f32 %v493_v12, 0.0 }
 0x12b   : > { %497 = vst.msk [vmem:[%s323_s15 + $0x8] sm:$0xff] %vm346_vm5, %v495_v13 }
 0x12c PF: > { %s17_s26 = sadd.s32 1, %s670_s26   ;;  %s812_s24 = smov %s666_s25 }
 0x12d   : > { %p14_p5 = scmp.ge.s32.totalorder %s17_s26, 4   ;;  %s813_s25 = smov %s815_s27 }
 0x12f   :  { %16 = sbr.rel (!%p14_p5) target bundleno = 2 (0x2), region = 81 }

// kernel: initial_block_forward.2
= control target key start
LH: loop header
LB: loop body
LE: loop exit
PB: predicated region body
PF: predicated region fallthrough
CT: control target
= control target key end

     0   :  { %s647_s18 = smov 0   ;;  %s649_s19 = smov 0   ;;  %s726_s0 = inlined_call_operand.vmem [shape: f32[2,27,64], index: 0, kind: input, shape index: {}]   ;;  %s727_s1 = inlined_call_operand.vmem [shape: f32[16,27], index: 1, kind: input, shape index: {}]   ;;  %s728_s2 = inlined_call_operand.vmem [shape: f32[16,3], index: 2, kind: input, shape index: {}]   ;;  %s729_s3 = inlined_call_operand.vmem [shape: s32[1,64], index: 3, kind: input, shape index: {}]   ;;  %s730_s4 = inlined_call_operand.vmem [shape: s32[9,1], index: 4, kind: input, shape index: {}]   ;;  %s731_s5 = inlined_call_operand.vmem [shape: f32[2,1,16,2], index: 5, kind: output, shape index: {}]  }
   0x1   :  { %s651_s20 = smov 0  }
   0x2 LB: > { %s27_s21 = sadd.s32 1, %s610_s19  ;;  %p545_p0 = scmp.ge.s32.totalorder %s614_s20, 1  ;;  %s614_s20 = sphi %s651_s20, %s15_s20   ;;  %s610_s19 = sphi %s649_s19, %s735_s19   ;;  %s606_s18 = sphi %s647_s18, %s734_s18  }
   0x3   : > { %p29_p1 = scmp.ge.s32.totalorder %s27_s21, 2  ;;  %p214_p2 = scmp.lt.s32.totalorder %s614_s20, 3 }
   0x5   : > { %s737_s21 = smov (%p29_p1, %s27_s21), 0  ;;  %p215_p3 = pnand %p545_p0, %p214_p2 }
   0x6   : > { %p252_p4 = scmp.lt.s32.totalorder (!%p215_p3), %s606_s18, 1 }
   0x7   : > { %218 = sbr.rel (%p215_p3) target bundleno = 537 (0x219), region = 40 }
   0xc   : > { %v279_v0 = vld [vmem:[%s730_s4] sm:$0xff]  ;;  %v616_v1 = vmov 0   ;;  %v280_v2 = vld [vmem:[%s730_s4 + $0x8] sm:$0x1]  ;;  %s739_s18 = smov (!%p252_p4, %s606_s18), 1  ;;  %vm355_vm0 = vcmask 1042432  }
   0xd   : > { %590 = vset.pattern.permute.xlu0 %v616_v1  ;;  %s558_s26 = sshll.u32 %s739_s18, 5  ;;  %v591_v7 = vld [vmem:[%s729_s3] ss:$0 sm:$0xff]  ;;  %vm382_vm1 = vcmask 220160   ;;  %v277_v9 = vld [vmem:[%s727_s1 + $0x8] sm:$0xff]  ;;  %vm307_vm2 = vcmask 1046528  }
   0xe   : > { %283 = vperm.xlu0 %590, %v279_v0   ;;  %s259_s29 = scalar_lea.vmem %s726_s0, %s558_s26  ;;  %v276_v8 = vld [vmem:[%s727_s1] sm:$0xff]  ;;  %vm325_vm3 = vcmask 1045504   ;;  %vm294_vm5 = vcmask 523264   ;;  %vm296_vm6 = vcmask 516096   ;;  %vm342_vm8 = vcmask 1040384   ;;  %v347_v56 = vld [vmem:[%s728_s2 + $0x8] sm:$0xff] }
   0xf   : > { %v275_v3 = vld [vmem:[%s259_s29 + $0x18] sm:$0x7]  ;;  %v274_v4 = vld [vmem:[%s259_s29 + $0x10] sm:$0xff]  ;;  %v273_v5 = vld [vmem:[%s259_s29 + $0x8] sm:$0xff]  ;;  %vm344_vm9 = vcmask 1041408   ;;  %vm348_vm10 = vcmask 23552  }
  0x10   : > { %553 = vmatpush.msk.msra.mxu1 %vm355_vm0, %v275_v3  ;;  %561 = vmatpush.msk.msra.mxu2 %vm355_vm0, %v275_v3  ;;  %v272_v6 = vld [vmem:[%s259_s29] sm:$0xff]  ;;  %v308_v12 = vrot.slane %v273_v5, 1  ;;  %v309_v13 = vrot.slane %v274_v4, 1  ;;  %v326_v14 = vrot.slane %v274_v4, 2  ;;  %v327_v15 = vrot.slane %v275_v3, 2  ;;  %s559_s15 = sshll.u32 %s739_s18, 4 }
  0x11   : > { %v346_v55 = vld [vmem:[%s728_s2] sm:$0xff]  ;;  %vm432_vm11 = vcmask 7168   ;;  %s271_s22 = scalar_lea.vmem %s731_s5, %s559_s15  ;;  %vm435_vm12 = vcmask 15360  }
  0x12   : > { %404 = vmatpush.msra.mxu1 %v274_v4  ;;  %562 = vmatpush.msra.mxu2 %v274_v4  ;;  %v310_v17 = vsel %vm307_vm2, %v308_v12, %v309_v13  ;;  %v328_v18 = vsel %vm325_vm3, %v326_v14, %v327_v15 }
  0x14   : > { %405 = vmatpush.msra.mxu1 %v273_v5  ;;  %563 = vmatpush.msra.mxu2 %v273_v5 }
  0x16   : > { %286 = vperm.xlu0 %590, %v280_v2   ;;  %406 = vmatpush.msra.mxu1 %v272_v6 }
  0x17   : > { %564 = vmatpush.msra.mxu2 %v272_v6  ;;  %554 = vmatmul.msk.f32.vlgmr.msra.gmra.mxu1 %vm382_vm1, %v276_v8 }
  0x18   : > { %555 = vmatmul.msk.f32.vlgmr.msra.gmra.mxu2 %vm382_vm1, %v277_v9 }
  0x80   : > { %v284_v10 = vpop.permute.xlu0 %283 }
  0x81   : > { %v288_v11 = vand.u32 %v591_v7, %v284_v10 }
  0x83   : > { %vm688_vm4 = vcmp.ne.s32.totalorder %v288_v11, 0 }
  0x84   : > { %v292_v19 = vsel %vm688_vm4, %v272_v6, -3.4028235e+38  ;;  %v313_v20 = vsel %vm688_vm4, %v310_v17, -3.4028235e+38  ;;  %v331_v23 = vsel %vm688_vm4, %v328_v18, -3.4028235e+38 }
  0x85   : > { %v295_v24 = vsel %vm294_vm5, %v292_v19, -inf  ;;  %v315_v25 = vsel %vm294_vm5, %v313_v20, -inf  ;;  %v333_v31 = vsel %vm294_vm5, %v331_v23, -inf }
  0x88   : > { %v287_v21 = vpop.permute.xlu0 %286 }
  0x89   : > { %v289_v22 = vand.u32 %v591_v7, %v287_v21 }
  0x8b   : > { %vm291_vm7 = vcmp.ne.s32.totalorder %v289_v22, 0 }
  0x8c   : > { %v293_v26 = vsel %vm291_vm7, %v273_v5, -3.4028235e+38  ;;  %v314_v27 = vsel %vm291_vm7, %v309_v13, -3.4028235e+38  ;;  %v332_v28 = vsel %vm291_vm7, %v327_v15, -3.4028235e+38 }
  0x8d   : > { %v297_v29 = vsel %vm296_vm6, %v293_v26, -inf  ;;  %v316_v30 = vsel %vm296_vm6, %v314_v27, -inf  ;;  %v334_v32 = vsel %vm296_vm6, %v332_v28, -inf }
  0x8e   : > { %v298_v33 = vmax.f32 %v295_v24, %v297_v29  ;;  %v317_v34 = vmax.f32 %v315_v25, %v316_v30  ;;  %v335_v35 = vmax.f32 %v333_v31, %v334_v32 }
  0x90   : > { %v299_v36 = vrot.slane %v298_v33, 4  ;;  %v318_v37 = vrot.slane %v317_v34, 4  ;;  %v336_v38 = vrot.slane %v335_v35, 4 }
  0x92   : > { %v300_v39 = vmax.f32 %v298_v33, %v299_v36  ;;  %v319_v40 = vmax.f32 %v317_v34, %v318_v37  ;;  %v337_v41 = vmax.f32 %v335_v35, %v336_v38 }
  0x94   : > { %v301_v42 = vrot.slane %v300_v39, 2  ;;  %v320_v43 = vrot.slane %v319_v40, 2  ;;  %v338_v44 = vrot.slane %v337_v41, 2  ;;  %v408_v58 = vpop.f32.mrf.mxu1 }
  0x96   : > { %v302_v45 = vmax.f32 %v300_v39, %v301_v42  ;;  %v321_v46 = vmax.f32 %v319_v40, %v320_v43  ;;  %v339_v47 = vmax.f32 %v337_v41, %v338_v44 }
  0x98   : > { %v303_v48 = vrot.slane %v302_v45, 1  ;;  %v322_v49 = vrot.slane %v321_v46, 1  ;;  %v340_v50 = vrot.slane %v339_v47, 1 }
  0x9a   : > { %v304_v51 = vmax.f32 %v302_v45, %v303_v48  ;;  %v323_v52 = vmax.f32 %v321_v46, %v322_v49  ;;  %v341_v53 = vmax.f32 %v339_v47, %v340_v50 }
  0x9b   : > { %v411_v62 = vpop.f32.mrf.mxu2 }
  0x9c   : > { %v343_v54 = vsel %vm342_vm8, %v304_v51, %v323_v52 }
  0x9d   : > { %v345_v57 = vsel %vm344_vm9, %v343_v54, %v341_v53 }
  0x9e   : > { %550 = vmatpush.msk.msra.mxu0 %vm355_vm0, %v345_v57  ;;  %560 = vmatpush.msk.msra.mxu3 %vm355_vm0, %v345_v57 }
  0x9f   : > { %551 = vmatmul.msk.f32.vlgmr.msra.gmra.mxu0 %vm348_vm10, %v346_v55  ;;  %552 = vmatmul.msk.f32.vlgmr.msra.gmra.mxu3 %vm348_vm10, %v347_v56 }
 0x11c   : > { %v376_v59 = vpop.f32.mrf.mxu0 }
 0x11d   : > { %v409_v60 = vadd.f32 %v408_v58, %v376_v59 }
 0x11f   : > { %v414_v61 = vsel %vm294_vm5, %v409_v60, 0.0 }
 0x120   : > { %415 = vadd.xlane.f32.xlu1 %v414_v61 }
 0x122   : > { %v379_v63 = vpop.f32.mrf.mxu3 }
 0x123   : > { %v412_v0 = vadd.f32 %v411_v62, %v379_v63 }
 0x125   : > { %v417_v1 = vsel %vm294_vm5, %v412_v0, 0.0 }
 0x128   : > { %418 = vadd.xlane.f32.xlu1 %v417_v1 }
 0x193   : > { %v416_v2 = vpop.xlane.xlu1 %415 }
 0x194   : > { %v420_v3 = vmul.f32 0.015625, %v416_v2 }
 0x196   : > { %v422_v4 = vsub.f32 %v409_v60, %v420_v3 }
 0x198   : > { %v424_v5 = vmul.f32 %v422_v4, %v422_v4 }
 0x19a   : > { %v426_v6 = vsel %vm294_vm5, %v424_v5, 0.0 }
 0x19b   : > { %427 = vadd.xlane.f32.xlu2 %v426_v6  ;;  %v419_v7 = vpop.xlane.xlu1 %418 }
 0x19c   : > { %v421_v8 = vmul.f32 0.015625, %v419_v7 }
 0x19e   : > { %v423_v9 = vsub.f32 %v412_v0, %v421_v8 }
 0x1a0   : > { %v425_v10 = vmul.f32 %v423_v9, %v423_v9 }
 0x1a2   : > { %v429_v11 = vsel %vm294_vm5, %v425_v10, 0.0 }
 0x1a3   : > { %430 = vadd.xlane.f32.xlu2 %v429_v11 }
 0x20e   : > { %v428_v12 = vpop.xlane.xlu2 %427 }
 0x20f   : > { %v433_v13 = vsel %vm432_vm11, %v416_v2, %v428_v12 }
 0x210   : > { %436 = vst.msk [vmem:[%s271_s22] sm:$0xff] %vm435_vm12, %v433_v13 }
 0x216   : > { %v431_v14 = vpop.xlane.xlu2 %430 }
 0x217   : > { %v434_v15 = vsel %vm432_vm11, %v419_v7, %v431_v14 }
 0x218   : > { %437 = vst.msk [vmem:[%s271_s22 + $0x8] sm:$0xff] %vm435_vm12, %v434_v15 }
 0x219 PF: > { %s15_s20 = sadd.s32 1, %s614_s20   ;;  %s734_s18 = smov %s610_s19 }
 0x21a   : > { %p12_p5 = scmp.ge.s32.totalorder %s15_s20, 4   ;;  %s735_s19 = smov %s737_s21 }
 0x21c   :  { %14 = sbr.rel (!%p12_p5) target bundleno = 2 (0x2), region = 73 }

</bundles_post_ra>
